<compile_context>
chip_gen: v7x
topology: tpu7x:2x2x1
jax: 0.10.0
libtpu: 0.0.40
codegen_flags: <defaults>
</compile_context>

<pallas_src>
import functools

import numpy as np
import jax
import jax.numpy as jnp
from jax.experimental import pallas as pl
from jax.experimental.pallas import tpu as pltpu


def _round_up(n, m):
    return ((n + m - 1) // m) * m


# ----------------------------- Pallas kernel ------------------------------- #

def actor_critic_kernel(x_ref, p_ref, o_ref, *, obs_p, H3P, A, OUT_P):
    """Fused actor/scaler/critic MLP with lane-dense output.

    x_ref : [TB, obs_p]                f32 (obs zero-padded to a multiple of 8)
    p_ref : [obs_p + 2*H3P + 32, H3P]  packed parameter slab (f32 or bf16)
    o_ref : [TB, OUT_P]                f32; lanes 0:A = mu, A:2A = std, 2A = v
    """
    x = x_ref[...]
    wdt = p_ref.dtype  # matmul operand dtype (f32 or bf16); accum/epilogue f32

    r = 0
    w1 = p_ref[r:r + obs_p, :]; r += obs_p            # [obs_p, H3P]
    b1 = p_ref[r:r + 1, :];     r += 8                 # [1, H3P]
    w2 = p_ref[r:r + H3P, :];   r += H3P               # [H3P, H3P] block-diag
    b2 = p_ref[r:r + 1, :];     r += 8
    w3 = p_ref[r:r + H3P, :];   r += H3P               # [H3P, H3P] block-diag
    b3 = p_ref[r:r + 1, :];     r += 8
    ls = p_ref[r:r + 1, 0:OUT_P].astype(jnp.float32)   # log_std at lanes [A:2A]

    h = jnp.dot(x.astype(wdt), w1, preferred_element_type=jnp.float32)
    h = jnp.maximum(h + b1.astype(jnp.float32), 0.0)
    h = jnp.dot(h.astype(wdt), w2, preferred_element_type=jnp.float32)
    h = jnp.maximum(h + b2.astype(jnp.float32), 0.0)
    y = jnp.dot(h.astype(wdt), w3, preferred_element_type=jnp.float32)
    y = y + b3.astype(jnp.float32)                     # [TB, H3P]

    y = y[:, 0:OUT_P]                                  # static, 128-aligned slice

    # Lane-masked epilogue (pure VPU + EUP, no cross-lane moves):
    #   lanes [A:2A] -> std = clip(exp(log_std * (sigmoid(y)*1.8 - 0.9)), 1e-6, 10)
    #   other lanes  -> y unchanged (mu in [0:A], v at lane 2A)
    lane = jax.lax.broadcasted_iota(jnp.int32, y.shape, 1)
    log_scale = jax.nn.sigmoid(y) * 1.8 - 0.9
    std_full = jnp.clip(jnp.exp(ls * log_scale), 1e-6, 10.0)
    o_ref[...] = jnp.where((lane >= A) & (lane < 2 * A), std_full, y)


# ------------------------------ Wrapper ------------------------------------ #

def actor_critic_forward(x, packed, *, obs_dim, act_dim, hidden, tile_b=1024):
    """x: [B, obs_dim] f32; packed: slab from pack_params. Returns (mu, std, v).

    tile_b: batch tile for the gridded path. Large (1024) to amortize per-grid-
    step overhead on single-TC v5e/v6e; since the grid path is only taken when
    B > tile_b, there are always >= 2 "parallel" steps for v7x's two TCs.
    Per-step VMEM (~3 MiB at tile_b=1024) is far under every chip's limit.
    """
    B = x.shape[0]
    obs_p = _round_up(obs_dim, 8)
    H3P = _round_up(3 * hidden, 128)
    OUT_P = 128                       # lane-dense output slab width
    assert 2 * act_dim + 1 <= OUT_P and OUT_P <= H3P

    if obs_p != obs_dim:
        x = jnp.pad(x, ((0, 0), (0, obs_p - obs_dim)))

    kern = functools.partial(actor_critic_kernel,
                             obs_p=obs_p, H3P=H3P, A=act_dim, OUT_P=OUT_P)
    vmem = pltpu.MemorySpace.VMEM

    if B <= tile_b:
        # Tiny batch: single grid-less invocation; pad rows to a full sublane group.
        B_pad = _round_up(B, 8)
        if B_pad != B:
            x = jnp.pad(x, ((0, B_pad - B), (0, 0)))
        out = pl.pallas_call(
            kern,
            out_shape=jax.ShapeDtypeStruct((B_pad, OUT_P), jnp.float32),
            in_specs=[pl.BlockSpec(memory_space=vmem),
                      pl.BlockSpec(memory_space=vmem)],
            out_specs=pl.BlockSpec(memory_space=vmem),
        )(x, packed)
    else:
        # Large batch: tile batch on a "parallel" grid axis (megacore on v7x).
        nb = pl.cdiv(B, tile_b)
        B_pad = nb * tile_b
        if B_pad != B:
            x = jnp.pad(x, ((0, B_pad - B), (0, 0)))
        out = pl.pallas_call(
            kern,
            grid=(nb,),
            out_shape=jax.ShapeDtypeStruct((B_pad, OUT_P), jnp.float32),
            in_specs=[pl.BlockSpec((tile_b, obs_p), lambda i: (i, 0)),
                      pl.BlockSpec(packed.shape, lambda i: (0, 0))],
            out_specs=pl.BlockSpec((tile_b, OUT_P), lambda i: (i, 0)),
            compiler_params=pltpu.CompilerParams(
                dimension_semantics=("parallel",)),
        )(x, packed)

    mu = out[:B, 0:act_dim]
    std = out[:B, act_dim:2 * act_dim]
    v = out[:B, 2 * act_dim]
    # TODO(synk): PyTorch's .squeeze(0) would drop the batch dim when B == 1;
    # this wrapper always returns [B, A] / [B].
    return mu, std, v


# --------------------------- Parameter packing ------------------------------ #

def pack_params(params, obs_dim, act_dim, hidden, dtype=jnp.float32):
    """Pack all three MLPs + log_std into one [obs_p + 2*H3P + 32, H3P] slab.

    H3P = round_up(3*hidden, 128): every section is lane-dense (128-multiple)
    and 8-row aligned.  log_std is stored pre-shifted into lanes [A:2A] so the
    kernel's multiply against sigmoid(y[:, A:2A]) is lane-aligned.
    Use dtype=jnp.bfloat16 on v6e/v7x for MXU throughput (f32 accumulate kept).
    """
    H, A = hidden, act_dim
    H3 = 3 * H
    H3P = _round_up(H3, 128)
    obs_p = _round_up(obs_dim, 8)

    aw1, ab1, aw2, ab2, aw3, ab3 = params["actor"]
    sw1, sb1, sw2, sb2, sw3, sb3 = params["scaler"]
    cw1, cb1, cw2, cb2, cw3, cb3 = params["critic"]

    # Layer 1: column concat; rows zero-padded to obs_p (x is zero-padded too).
    W1 = jnp.zeros((obs_p, H3P), jnp.float32)
    W1 = (W1.at[:obs_dim, 0:H].set(aw1)
             .at[:obs_dim, H:2 * H].set(sw1)
             .at[:obs_dim, 2 * H:3 * H].set(cw1))
    b1 = jnp.zeros((1, H3P), jnp.float32)
    b1 = b1.at[:, 0:H].set(ab1).at[:, H:2 * H].set(sb1).at[:, 2 * H:3 * H].set(cb1)

    # Layer 2: block-diagonal.
    W2 = jnp.zeros((H3P, H3P), jnp.float32)
    W2 = (W2.at[0:H, 0:H].set(aw2)
             .at[H:2 * H, H:2 * H].set(sw2)
             .at[2 * H:3 * H, 2 * H:3 * H].set(cw2))
    b2 = jnp.zeros((1, H3P), jnp.float32)
    b2 = b2.at[:, 0:H].set(ab2).at[:, H:2 * H].set(sb2).at[:, 2 * H:3 * H].set(cb2)

    # Layer 3: block-diagonal into output lanes [0:A]=mu, [A:2A]=scaler, [2A]=v.
    W3 = jnp.zeros((H3P, H3P), jnp.float32)
    W3 = (W3.at[0:H, 0:A].set(aw3)
             .at[H:2 * H, A:2 * A].set(sw3)
             .at[2 * H:3 * H, 2 * A:2 * A + 1].set(cw3))
    b3 = jnp.zeros((1, H3P), jnp.float32)
    b3 = (b3.at[:, 0:A].set(ab3)
             .at[:, A:2 * A].set(sb3)
             .at[:, 2 * A:2 * A + 1].set(cb3))

    # log_std pre-shifted into lanes [A:2A] (lane-aligned with scaler output).
    ls = jnp.zeros((1, H3P), jnp.float32).at[:, A:2 * A].set(params["log_std"])

    def pad_row(row):  # [1, H3P] -> [8, H3P]: keep every section 8-row aligned
        return jnp.pad(row, ((0, 7), (0, 0)))

    slab = jnp.concatenate(
        [W1, pad_row(b1), W2, pad_row(b2), W3, pad_row(b3), pad_row(ls)], axis=0)
    return slab.astype(dtype)


# ------------------------- Deterministic init ------------------------------ #

def _orthogonal(key, in_dim, out_dim, gain):
    """Orthogonal init (QR-based), returned as [in_dim, out_dim]."""
    big, small = max(in_dim, out_dim), min(in_dim, out_dim)
    a = jax.random.normal(key, (big, small), dtype=jnp.float32)
    q, r = jnp.linalg.qr(a)
    q = q * jnp.sign(jnp.diag(r))
    w = q if (in_dim, out_dim) == (big, small) else q.T
    return gain * w.astype(jnp.float32)


def init_mlp_params(key, in_dim, hidden, out_dim):
    gain = float(np.sqrt(2.0))
    k1, k2, k3 = jax.random.split(key, 3)
    w1 = _orthogonal(k1, in_dim, hidden, gain)
    w2 = _orthogonal(k2, hidden, hidden, gain)
    w3 = _orthogonal(k3, hidden, out_dim, gain)
    b1 = jnp.zeros((1, hidden), jnp.float32)
    b2 = jnp.zeros((1, hidden), jnp.float32)
    b3 = jnp.zeros((1, out_dim), jnp.float32)
    return (w1, b1, w2, b2, w3, b3)


def init_actor_critic(key, obs_dim, act_dim, hidden):
    ka, ks, kc = jax.random.split(key, 3)
    return {
        "actor": init_mlp_params(ka, obs_dim, hidden, act_dim),
        "scaler": init_mlp_params(ks, obs_dim, hidden, act_dim),
        "critic": init_mlp_params(kc, obs_dim, hidden, 1),
        "log_std": jnp.zeros((1, act_dim), jnp.float32),  # nn.Parameter(zeros(act_dim))
    }


# --------------------------- Pure-JAX reference ----------------------------- #

def reference_forward(x, params):
    def mlp3(x, p):
        w1, b1, w2, b2, w3, b3 = p
        h = jnp.maximum(x @ w1 + b1, 0.0)
        h = jnp.maximum(h @ w2 + b2, 0.0)
        return h @ w3 + b3
    mu = mlp3(x, params["actor"])
    log_scale = jax.nn.sigmoid(mlp3(x, params["scaler"])) * 1.8 - 0.9
    std = jnp.clip(jnp.exp(params["log_std"] * log_scale), 1e-6, 10.0)
    v = mlp3(x, params["critic"])
    return mu, std, jnp.squeeze(v, axis=-1)


# --------------------------------- Main ------------------------------------ #

if __name__ == "__main__":
    # Small Walker-like shapes: obs_dim=16, act_dim=4, hidden=32
    OBS, ACT, HID = 16, 4, 32

    key = jax.random.PRNGKey(0)
    k_x, k_x2, k_p, k_ls = jax.random.split(key, 4)
    params = init_actor_critic(k_p, OBS, ACT, HID)
    # Use a non-zero log_std so the std lane path is actually exercised
    # (PyTorch init is zeros, which would make std trivially 1).
    params["log_std"] = 0.1 * jax.random.normal(k_ls, (1, ACT), dtype=jnp.float32)

    packed = pack_params(params, OBS, ACT, HID)

    # --- tiny batch (grid-less path, rows padded to a sublane group) ---
    B = 2
    x = jax.random.normal(k_x, (B, OBS), dtype=jnp.float32)
    mu, std, v = actor_critic_forward(x, packed, obs_dim=OBS, act_dim=ACT, hidden=HID)
    jax.block_until_ready((mu, std, v))

    mu_ref, std_ref, v_ref = reference_forward(x, params)
    assert mu.shape == (B, ACT) and std.shape == (B, ACT) and v.shape == (B,)
    assert np.allclose(np.asarray(mu), np.asarray(mu_ref), atol=1e-4, rtol=1e-4)
    assert np.allclose(np.asarray(std), np.asarray(std_ref), atol=1e-4, rtol=1e-4)
    assert np.allclose(np.asarray(v), np.asarray(v_ref), atol=1e-4, rtol=1e-4)

    # --- larger batch (batch-tiled "parallel" grid path: 2 even grid steps) ---
    B2 = 2048
    x2 = jax.random.normal(k_x2, (B2, OBS), dtype=jnp.float32)
    mu2, std2, v2 = actor_critic_forward(
        x2, packed, obs_dim=OBS, act_dim=ACT, hidden=HID, tile_b=1024)
    jax.block_until_ready((mu2, std2, v2))

    mu2_ref, std2_ref, v2_ref = reference_forward(x2, params)
    assert mu2.shape == (B2, ACT) and std2.shape == (B2, ACT) and v2.shape == (B2,)
    assert np.allclose(np.asarray(mu2), np.asarray(mu2_ref), atol=1e-4, rtol=1e-4)
    assert np.allclose(np.asarray(std2), np.asarray(std2_ref), atol=1e-4, rtol=1e-4)
    assert np.allclose(np.asarray(v2), np.asarray(v2_ref), atol=1e-4, rtol=1e-4)

    # --- bf16 weight/activation path (v6e/v7x MXU), f32 accumulate/epilogue ---
    packed_bf16 = pack_params(params, OBS, ACT, HID, dtype=jnp.bfloat16)
    mu3, std3, v3 = actor_critic_forward(
        x2, packed_bf16, obs_dim=OBS, act_dim=ACT, hidden=HID, tile_b=1024)
    jax.block_until_ready((mu3, std3, v3))
    assert np.allclose(np.asarray(mu3), np.asarray(mu2_ref), atol=1e-1, rtol=1e-1)
    assert np.allclose(np.asarray(std3), np.asarray(std2_ref), atol=1e-1, rtol=1e-1)
    assert np.allclose(np.asarray(v3), np.asarray(v2_ref), atol=1e-1, rtol=1e-1)

    print("KERNEL_OK")
</pallas_src>

<mosaic_0001>
module attributes {stable_mosaic.version = 11 : i64} {
  func.func @actor_critic_kernel(%arg0: memref<8x16xf32, #tpu.memory_space<vmem>>, %arg1: memref<304x128xf32, #tpu.memory_space<vmem>>, %arg2: memref<8x128xf32, #tpu.memory_space<vmem>>) attributes {dimension_semantics = [], scalar_prefetch = 0 : i64, scratch_operands = 0 : i64, tpu.core_type = #tpu.core_type<tc>} {
    %c0 = arith.constant 0 : index
    %c0_0 = arith.constant 0 : index
    %0 = vector.load %arg0[%c0, %c0_0] : memref<8x16xf32, #tpu.memory_space<vmem>>, vector<8x16xf32>
    %c0_1 = arith.constant 0 : index
    %c0_2 = arith.constant 0 : index
    %1 = vector.load %arg1[%c0_1, %c0_2] : memref<304x128xf32, #tpu.memory_space<vmem>>, vector<16x128xf32>
    %c16 = arith.constant 16 : index
    %c0_3 = arith.constant 0 : index
    %2 = vector.load %arg1[%c16, %c0_3] : memref<304x128xf32, #tpu.memory_space<vmem>>, vector<1x128xf32>
    %c24 = arith.constant 24 : index
    %c0_4 = arith.constant 0 : index
    %3 = vector.load %arg1[%c24, %c0_4] : memref<304x128xf32, #tpu.memory_space<vmem>>, vector<128x128xf32>
    %c152 = arith.constant 152 : index
    %c0_5 = arith.constant 0 : index
    %4 = vector.load %arg1[%c152, %c0_5] : memref<304x128xf32, #tpu.memory_space<vmem>>, vector<1x128xf32>
    %c160 = arith.constant 160 : index
    %c0_6 = arith.constant 0 : index
    %5 = vector.load %arg1[%c160, %c0_6] : memref<304x128xf32, #tpu.memory_space<vmem>>, vector<128x128xf32>
    %c288 = arith.constant 288 : index
    %c0_7 = arith.constant 0 : index
    %6 = vector.load %arg1[%c288, %c0_7] : memref<304x128xf32, #tpu.memory_space<vmem>>, vector<1x128xf32>
    %c296 = arith.constant 296 : index
    %c0_8 = arith.constant 0 : index
    %7 = vector.load %arg1[%c296, %c0_8] : memref<304x128xf32, #tpu.memory_space<vmem>>, vector<1x128xf32>
    %cst = arith.constant dense<0.000000e+00> : vector<8x128xf32>
    %8 = tpu.matmul %0, %1, %cst {dimension_numbers = #tpu.dot_dimension_numbers<[1], [0], [0], [1], [0, 0, 1, 1], [], []>} : vector<8x16xf32>, vector<16x128xf32>, vector<8x128xf32> -> vector<8x128xf32>
    %9 = vector.broadcast %2 : vector<1x128xf32> to vector<8x128xf32>
    %10 = arith.addf %8, %9 : vector<8x128xf32>
    %cst_9 = arith.constant 0.000000e+00 : f32
    %11 = vector.broadcast %cst_9 : f32 to vector<8x128xf32>
    %12 = arith.maximumf %10, %11 : vector<8x128xf32>
    %cst_10 = arith.constant dense<0.000000e+00> : vector<8x128xf32>
    %13 = tpu.matmul %12, %3, %cst_10 {dimension_numbers = #tpu.dot_dimension_numbers<[1], [0], [0], [1], [0, 0, 1, 1], [], []>} : vector<8x128xf32>, vector<128x128xf32>, vector<8x128xf32> -> vector<8x128xf32>
    %14 = vector.broadcast %4 : vector<1x128xf32> to vector<8x128xf32>
    %15 = arith.addf %13, %14 : vector<8x128xf32>
    %cst_11 = arith.constant 0.000000e+00 : f32
    %16 = vector.broadcast %cst_11 : f32 to vector<8x128xf32>
    %17 = arith.maximumf %15, %16 : vector<8x128xf32>
    %cst_12 = arith.constant dense<0.000000e+00> : vector<8x128xf32>
    %18 = tpu.matmul %17, %5, %cst_12 {dimension_numbers = #tpu.dot_dimension_numbers<[1], [0], [0], [1], [0, 0, 1, 1], [], []>} : vector<8x128xf32>, vector<128x128xf32>, vector<8x128xf32> -> vector<8x128xf32>
    %19 = vector.broadcast %6 : vector<1x128xf32> to vector<8x128xf32>
    %20 = arith.addf %18, %19 : vector<8x128xf32>
    %21 = tpu.iota {dimensions = array<i32: 1>} : vector<8x128xi32>
    %22 = arith.negf %20 : vector<8x128xf32>
    %23 = math.exp %22 : vector<8x128xf32>
    %cst_13 = arith.constant 1.000000e+00 : f32
    %24 = vector.broadcast %cst_13 : f32 to vector<8x128xf32>
    %25 = arith.addf %24, %23 : vector<8x128xf32>
    %26 = arith.divf %24, %25 : vector<8x128xf32>
    %cst_14 = arith.constant 1.800000e+00 : f32
    %27 = vector.broadcast %cst_14 : f32 to vector<8x128xf32>
    %28 = arith.mulf %26, %27 : vector<8x128xf32>
    %cst_15 = arith.constant 0.899999976 : f32
    %29 = vector.broadcast %cst_15 : f32 to vector<8x128xf32>
    %30 = arith.subf %28, %29 : vector<8x128xf32>
    %31 = vector.broadcast %7 : vector<1x128xf32> to vector<8x128xf32>
    %32 = arith.mulf %31, %30 : vector<8x128xf32>
    %33 = math.exp %32 : vector<8x128xf32>
    %cst_16 = arith.constant 9.99999997E-7 : f32
    %cst_17 = arith.constant 1.000000e+01 : f32
    %34 = vector.broadcast %cst_16 : f32 to vector<8x128xf32>
    %35 = arith.maximumf %34, %33 : vector<8x128xf32>
    %36 = vector.broadcast %cst_17 : f32 to vector<8x128xf32>
    %37 = arith.minimumf %36, %35 : vector<8x128xf32>
    %c4_i32 = arith.constant 4 : i32
    %38 = vector.broadcast %c4_i32 : i32 to vector<8x128xi32>
    %39 = arith.cmpi sge, %21, %38 : vector<8x128xi32>
    %c8_i32 = arith.constant 8 : i32
    %40 = vector.broadcast %c8_i32 : i32 to vector<8x128xi32>
    %41 = arith.cmpi slt, %21, %40 : vector<8x128xi32>
    %42 = arith.andi %39, %41 : vector<8x128xi1>
    %43 = arith.select %42, %37, %20 : vector<8x128xi1>, vector<8x128xf32>
    %c0_18 = arith.constant 0 : index
    %c0_19 = arith.constant 0 : index
    %44 = vector.load %arg2[%c0_18, %c0_19] : memref<8x128xf32, #tpu.memory_space<vmem>>, vector<8x128xf32>
    tpu.vector_store %arg2[%c0_18, %c0_19], %43 {strides = array<i32>} : memref<8x128xf32, #tpu.memory_space<vmem>>, vector<8x128xf32>,
    return
  }
}

</mosaic_0001>

<bundles_post_ra>
// kernel: tpu_custom_call.1
= control target key start
LH: loop header
LB: loop body
LE: loop exit
PB: predicated region body
PF: predicated region fallthrough
CT: control target
= control target key end

     0   :  { %7 = vsyncpa [#allocation3], 0  ;;  %s689_s0 = inlined_call_operand.hbm [shape: f32[8,16], index: 0, kind: input, shape index: {}]   ;;  %s690_s1 = inlined_call_operand.hbm [shape: f32[304,128], index: 1, kind: input, shape index: {}]   ;;  %s691_s2 = inlined_call_operand.hbm [shape: f32[8,128], index: 2, kind: output, shape index: {}]  }
   0x1   :  { %8 = vsyncpa [#allocation6], 0 }
   0x2   :  { %9 = vsyncpa [#allocation4], 0  ;;  %s603_s9 = smov [#allocation2]   ;;  %s604_s11 = smov [#allocation5]  }
   0x3   :  { %s16_s10 = sshll.u32 %s603_s9, 4  ;;  %s25_s12 = sshll.u32 %s604_s11, 4  ;;  %s17_s10 = int_to_ptr.vmem [resolvable:$true] %s16_s10  ;;  %s626_s12 = int_to_ptr.vmem [resolvable:$true] %s25_s12 }
   0x4   :  { %s531_s15 = scalar_lea.hbm %s689_s0, 128 }
   0x5   :  { %p532_p0 = scmp.ne.s32.totalorder %s689_s0, %s531_s15  ;;  %p535_p1 = scmp.lt.u32.totalorder %s531_s15, %s689_s0 }
   0x7   :  { %p537_p2 = pnand %p535_p1, %p532_p0 }
   0x9   :  { %540 = shalt.err (!%p537_p2)
}
   0xa   :  { %s541_s20 = scalar_lea.vmem %s17_s10, 128  ;;  %p546_p4 = scmp.lt.s32.totalorder %s17_s10, %s17_s10 }
   0xb   :  { %p542_p3 = scmp.ne.s32.totalorder %s17_s10, %s541_s20  ;;  %p547_p5 = scmp.lt.s32.totalorder %s541_s20, %s541_s20 }
   0xd   :  { %p548_p6 = por %p547_p5, %p546_p4 }
   0xf   :  { %p549_p7 = pnand %p548_p6, %p542_p3 }
  0x11   :  { %552 = shalt.err (!%p549_p7)
}
  0x12   :  { %19 = dma.hbm_to_vmem [thread:$0]  %s689_s0, 128, %s17_s10, [#allocation3]  }
  0x13   :  { %s553_s25 = scalar_lea.hbm %s690_s1, 4864 }
  0x14   :  { %p554_p8 = scmp.ne.s32.totalorder %s690_s1, %s553_s25  ;;  %p557_p9 = scmp.lt.u32.totalorder %s553_s25, %s690_s1 }
  0x16   :  { %p559_p10 = pnand %p557_p9, %p554_p8 }
  0x18   :  { %562 = shalt.err (!%p559_p10)
}
  0x19   :  { %s563_s30 = scalar_lea.vmem %s626_s12, 4864  ;;  %p568_p12 = scmp.lt.s32.totalorder %s626_s12, %s626_s12 }
  0x1a   :  { %p564_p11 = scmp.ne.s32.totalorder %s626_s12, %s563_s30  ;;  %p569_p13 = scmp.lt.s32.totalorder %s563_s30, %s563_s30 }
  0x1c   :  { %p570_p0 = por %p569_p13, %p568_p12 }
  0x1e   :  { %p571_p1 = pnand %p570_p0, %p564_p11 }
  0x20   :  { %574 = shalt.err (!%p571_p1)
}
  0x21   :  { %s605_s0 = smov 128   ;;  %s606_s3 = smov 8  }
  0x22   :  { %31 = dma.hbm_to_vmem [thread:$0]  %s690_s1, 4864, %s626_s12, [#allocation6], %s605_s0, %s605_s0, %s606_s3  }
  0x23   :  { %597 = dma.done.wait [#allocation3], 128  }
  0x24   :  { %598 = vsyncadd [#allocation3], 4294967168 }
  0x25   :  { %599 = dma.done.wait [#allocation6], 4864  }
  0x26   :  { %600 = vsyncadd [#allocation6], 4294962432  ;;  %v607_v0 = vmov 0.0|0.0   ;;  %vm608_vm0 = vmmov 0   ;;  %v609_v1 = vmov 0.0   ;;  %v39_v2 = vld [vmem:[#allocation5] sm:$0xff] }
  0x27   :  { %466 = vmatprep.subr.bf16.mxu0 %v607_v0  ;;  %393 = vmatprep.mubr.msk.f32.mxu0 %vm608_vm0, %v609_v1  ;;  %v40_v3 = vld [vmem:[#allocation5 + $0x8] sm:$0xff]  ;;  %v42_v5 = vld [vmem:[#allocation5 + $0x18] sm:$0xff]  ;;  %v43_v6 = vld [vmem:[#allocation5 + $0x20] sm:$0xff]  ;;  %vm81_vm1 = vcmask 130048   ;;  %s610_s1 = smov [#allocation7]  }
  0x28   :  { %469 = vmatprep.subr.bf16.mxu1 %v607_v0  ;;  %428 = vmatprep.mubr.msk.f32.mxu1 %vm608_vm0, %v609_v1  ;;  %v467_v4 = vpack.c.bf16 %v40_v3, %v39_v2  ;;  %v44_v7 = vld [vmem:[#allocation5 + $0x28] sm:$0xff]  ;;  %v470_v8 = vpack.c.bf16 %v43_v6, %v42_v5  ;;  %v45_v9 = vld [vmem:[#allocation5 + $0x30] sm:$0xff]  ;;  %v38_v10 = vld [vmem:[#allocation2] sm:$0xff]  ;;  %s335_s6 = sshll.u32 %s610_s1, 4  ;;  %s336_s6 = int_to_ptr.vmem [resolvable:$true] %s335_s6 }
  0x29   :  { %v473_v11 = vpack.c.bf16 %v45_v9, %v44_v7  ;;  %v46_v12 = vld [vmem:[#allocation5 + $0x38] sm:$0xff]  ;;  %v47_v13 = vld [vmem:[#allocation5 + $0x40] sm:$0xff]  ;;  %v48_v15 = vld [vmem:[#allocation5 + $0x48] sm:$0xff]  ;;  %s575_s7 = scalar_lea.vmem %s336_s6, 128  ;;  %p580_p3 = scmp.lt.s32.totalorder %s336_s6, %s336_s6 }
  0x2a   :  { %468 = vmatpush3.bf16.msra.mxu0 %v467_v4  ;;  %471 = vmatpush3.bf16.msra.mxu1 %v470_v8  ;;  %v476_v14 = vpack.c.bf16 %v47_v13, %v46_v12  ;;  %v49_v16 = vld [vmem:[#allocation5 + $0x50] sm:$0xff]  ;;  %v50_v18 = vld [vmem:[#allocation5 + $0x58] sm:$0xff]  ;;  %v51_v19 = vld [vmem:[#allocation5 + $0x60] sm:$0xff]  ;;  %v305_v13 = vlaneseq  ;;  %p576_p2 = scmp.ne.s32.totalorder %s336_s6, %s575_s7  ;;  %p581_p4 = scmp.lt.s32.totalorder %s575_s7, %s575_s7 }
  0x2b   :  { %493 = vmatprep.subr.bf16.mxu0 %v607_v0  ;;  %472 = vmatprep.subr.bf16.mxu1 %v607_v0  ;;  %v479_v17 = vpack.c.bf16 %v49_v16, %v48_v15  ;;  %v482_v20 = vpack.c.bf16 %v51_v19, %v50_v18  ;;  %v52_v21 = vld [vmem:[#allocation5 + $0x68] sm:$0xff]  ;;  %v53_v22 = vld [vmem:[#allocation5 + $0x70] sm:$0xff]  ;;  %v54_v24 = vld [vmem:[#allocation5 + $0x78] sm:$0xff] }
  0x2c   :  { %v485_v23 = vpack.c.bf16 %v53_v22, %v52_v21  ;;  %v55_v25 = vld [vmem:[#allocation5 + $0x80] sm:$0xff]  ;;  %v56_v27 = vld [vmem:[#allocation5 + $0x88] sm:$0xff]  ;;  %v57_v28 = vld [vmem:[#allocation5 + $0x90] sm:$0xff]  ;;  %p582_p5 = por %p581_p4, %p580_p3 }
  0x2d   :  { %394 = vmatmul.mubr.msk.f32.vlgmr.msra.gmra.mrb[0].mxu0 %vm81_vm1, %v38_v10  ;;  %v488_v26 = vpack.c.bf16 %v55_v25, %v54_v24  ;;  %v491_v29 = vpack.c.bf16 %v57_v28, %v56_v27  ;;  %v59_v30 = vld [vmem:[#allocation5 + $0xa0] sm:$0xff]  ;;  %v60_v31 = vld [vmem:[#allocation5 + $0xa8] sm:$0xff]  ;;  %v61_v32 = vld [vmem:[#allocation5 + $0xb0] sm:$0xff] }
  0x2e   :  { %463 = vmatprep.mubr.msk.f32.mxu0 %vm608_vm0, %v609_v1  ;;  %474 = vmatpush3.bf16.msra.mxu1 %v473_v11  ;;  %v494_v33 = vpack.c.bf16 %v60_v31, %v59_v30  ;;  %v62_v34 = vld [vmem:[#allocation5 + $0xb8] sm:$0xff]  ;;  %v63_v36 = vld [vmem:[#allocation5 + $0xc0] sm:$0xff]  ;;  %v64_v37 = vld [vmem:[#allocation5 + $0xc8] sm:$0xff]  ;;  %p583_p6 = pnand %p582_p5, %p576_p2 }
  0x2f   :  { %475 = vmatprep.subr.bf16.mxu1 %v607_v0  ;;  %v497_v35 = vpack.c.bf16 %v62_v34, %v61_v32  ;;  %v500_v38 = vpack.c.bf16 %v64_v37, %v63_v36  ;;  %v65_v39 = vld [vmem:[#allocation5 + $0xd0] sm:$0xff]  ;;  %v66_v40 = vld [vmem:[#allocation5 + $0xd8] sm:$0xff]  ;;  %v67_v42 = vld [vmem:[#allocation5 + $0xe0] sm:$0xff] }
  0x30   :  { %495 = vmatpush3.bf16.msra.mxu0 %v494_v33  ;;  %v503_v41 = vpack.c.bf16 %v66_v40, %v65_v39  ;;  %v68_v43 = vld [vmem:[#allocation5 + $0xe8] sm:$0xff]  ;;  %v69_v45 = vld [vmem:[#allocation5 + $0xf0] sm:$0xff]  ;;  %v70_v46 = vld [vmem:[#allocation5 + $0xf8] sm:$0xff] }
  0x31   :  { %496 = vmatprep.subr.bf16.mxu0 %v607_v0  ;;  %v506_v44 = vpack.c.bf16 %v68_v43, %v67_v42  ;;  %v509_v47 = vpack.c.bf16 %v70_v46, %v69_v45  ;;  %v71_v48 = vld [vmem:[#allocation5 + $0x100] sm:$0xff]  ;;  %v72_v49 = vld [vmem:[#allocation5 + $0x108] sm:$0xff]  ;;  %v345_v51 = vld [vmem:[#allocation5 + $0x10] ss:$0 sm:$0xff] }
  0x32   :  { %477 = vmatpush3.bf16.msra.mxu1 %v476_v14  ;;  %v512_v50 = vpack.c.bf16 %v72_v49, %v71_v48  ;;  %v73_v56 = vld [vmem:[#allocation5 + $0x110] sm:$0xff]  ;;  %v74_v57 = vld [vmem:[#allocation5 + $0x118] sm:$0xff]  ;;  %v348_v1 = vld [vmem:[#allocation5 + $0x120] ss:$0 sm:$0xff]  ;;  %v306_v14 = vand.u32 127, %v305_v13 }
  0x33   :  { %478 = vmatprep.subr.bf16.mxu1 %v607_v0  ;;  %v515_v58 = vpack.c.bf16 %v74_v57, %v73_v56  ;;  %v347_v59 = vld [vmem:[#allocation5 + $0x98] ss:$0 sm:$0xff]  ;;  %v351_v9 = vld [vmem:[#allocation5 + $0x128] ss:$0 sm:$0xff] }
  0x34   :  { %498 = vmatpush3.bf16.msra.mxu0 %v497_v35  ;;  %vm324_vm2 = vcmp.ge.s32.totalorder %v306_v14, 4  ;;  %vm325_vm3 = vcmp.lt.s32.totalorder %v306_v14, 8 }
  0x35   :  { %499 = vmatprep.subr.bf16.mxu0 %v607_v0  ;;  %vm326_vm4 = vmand %vm324_vm2, %vm325_vm3 }
  0x36   :  { %480 = vmatpush3.bf16.msra.mxu1 %v479_v17 }
  0x37   :  { %481 = vmatprep.subr.bf16.mxu1 %v607_v0 }
  0x38   :  { %501 = vmatpush3.bf16.msra.mxu0 %v500_v38 }
  0x39   :  { %502 = vmatprep.subr.bf16.mxu0 %v607_v0 }
  0x3a   :  { %483 = vmatpush3.bf16.msra.mxu1 %v482_v20 }
  0x3b   :  { %484 = vmatprep.subr.bf16.mxu1 %v607_v0 }
  0x3c   :  { %504 = vmatpush3.bf16.msra.mxu0 %v503_v41 }
  0x3d   :  { %505 = vmatprep.subr.bf16.mxu0 %v607_v0 }
  0x3e   :  { %486 = vmatpush3.bf16.msra.mxu1 %v485_v23 }
  0x3f   :  { %487 = vmatprep.subr.bf16.mxu1 %v607_v0 }
  0x40   :  { %507 = vmatpush3.bf16.msra.mxu0 %v506_v44 }
  0x41   :  { %508 = vmatprep.subr.bf16.mxu0 %v607_v0 }
  0x42   :  { %489 = vmatpush3.bf16.msra.mxu1 %v488_v26 }
  0x43   :  { %490 = vmatprep.subr.bf16.mxu1 %v607_v0 }
  0x44   :  { %510 = vmatpush3.bf16.msra.mxu0 %v509_v47 }
  0x45   :  { %511 = vmatprep.subr.bf16.mxu0 %v607_v0 }
  0x46   :  { %492 = vmatpush3.bf16.msra.mxu1 %v491_v29 }
  0x48   :  { %513 = vmatpush3.bf16.msra.mxu0 %v512_v50 }
  0x49   :  { %514 = vmatprep.subr.bf16.mxu0 %v607_v0 }
  0x4c   :  { %516 = vmatpush3.bf16.msra.mxu0 %v515_v58 }
 0x100   :  { %v151_v52 = vpop.f32.mrb[0].mxu0 }
 0x101   :  { %v152_v53 = vadd.f32 %v345_v51, %v151_v52  ;;  %v395_v54 = vpop.f32.mrb[1].mxu0 }
 0x103   :  { %v155_v55 = vmax.f32 %v152_v53, 0.0 }
 0x105   :  { %429 = vmatmul.mubr.f32.vlgmr.msra.gmra.mrb[0].mxu1 %v155_v55 }
 0x1d8   :  { %v226_v60 = vpop.f32.mrb[0].mxu1 }
 0x1d9   :  { %v227_v61 = vadd.f32 %v347_v59, %v226_v60  ;;  %v430_v62 = vpop.f32.mrb[1].mxu1 }
 0x1db   :  { %v230_v63 = vmax.f32 %v227_v61, 0.0 }
 0x1dd   :  { %464 = vmatmul.mubr.f32.vlgmr.msra.gmra.mrb[2].mxu0 %v230_v63 }
 0x2b0   :  { %v301_v2 = vpop.f32.mrb[2].mxu0 }
 0x2b1   :  { %v302_v3 = vadd.f32 %v348_v1, %v301_v2  ;;  %v465_v0 = vpop.f32.mrb[3].mxu0 }
 0x2b3   :  { %v349_v4 = vmul.f32 -1.442695, %v302_v3 }
 0x2b5   :  { %525 = vpow2.f32 %v349_v4 }
 0x2bf   :  { %v526_v5 = vpop.eup %525 }
 0x2c0   :  { %v310_v6 = vadd.f32 1.0, %v526_v5 }
 0x2c2   :  { %527 = vrcp.f32 %v310_v6 }
 0x2cc   :  { %v528_v7 = vpop.eup %527 }
 0x2cd   :  { %v313_v8 = vmul.f32 1.8, %v528_v7 }
 0x2cf   :  { %v350_v10 = vadd.f32 -0.9, %v313_v8 }
 0x2d1   :  { %v319_v11 = vmul.f32 %v351_v9, %v350_v10 }
 0x2d3   :  { %v320_v12 = vmul.f32 1.442695, %v319_v11 }
 0x2d5   :  { %529 = vpow2.f32 %v320_v12 }
 0x2df   :  { %v530_v15 = vpop.eup %529 }
 0x2e0   :  { %v322_v16 = vmax.f32 %v530_v15, 1e-06 }
 0x2e2   :  { %v323_v17 = vmin.f32 %v322_v16, 10.0 }
 0x2e4   :  { %v327_v18 = vsel %vm326_vm4, %v323_v17, %v302_v3 }
 0x2e5   :  { %328 = vst [vmem:[#allocation7] sm:$0xff] %v327_v18 }
 0x2e6   :  { %586 = shalt.err (!%p583_p6)
}
 0x2e7   :  { %s587_s10 = scalar_lea.hbm %s691_s2, 128 }
 0x2e8   :  { %p588_p7 = scmp.ne.s32.totalorder %s691_s2, %s587_s10  ;;  %p591_p8 = scmp.lt.u32.totalorder %s587_s10, %s691_s2 }
 0x2ea   :  { %p593_p9 = pnand %p591_p8, %p588_p7 }
 0x2ec   :  { %596 = shalt.err (!%p593_p9)
}
 0x2ed   :  { %338 = dma.vmem_to_hbm [thread:$0]  %s336_s6, 128, %s691_s2, [#allocation4]  }
 0x2ee   :  { %601 = dma.done.wait [#allocation4], 128  }
 0x2ef   :  { %602 = vsyncadd [#allocation4], 4294967168 }
 0x2f0   :  { %342 = vsyncpa [#allocation3], 1 }
 0x2f1   :  { %343 = vsyncpa [#allocation6], 1 }
 0x2f2   :  { %344 = vsyncpa [#allocation4], 1 }

</bundles_post_ra>
